<compile_context>
chip_gen: v7x
topology: tpu7x:2x2x1
jax: 0.10.0
libtpu: 0.0.40
codegen_flags: <defaults>
</compile_context>

<pallas_src>
import math

import jax
import jax.numpy as jnp
from jax.experimental import pallas as pl
from jax.experimental.pallas import tpu as pltpu

EPS = 1e-4


def _round_up(x: int, m: int) -> int:
    return ((x + m - 1) // m) * m


def _sublane_multiple(dtype) -> int:
    # f32 -> 8, bf16 -> 16, int8/fp8 -> 32 (packed sublane counts).
    return max(8, 32 // jnp.dtype(dtype).itemsize)


def _vmem_capacity_bytes() -> int:
    try:
        cap = int(getattr(pltpu.get_tpu_info(), "vmem_capacity_bytes"))
        if cap > 0:
            return cap
    except Exception:
        pass
    return 64 << 20  # conservative fallback (v7x per-TensorCore VMEM)


# ----------------------------- kernels -------------------------------------


def _mp_linear_kernel_scratch(x_ref, w_ref, s_ref, o_ref, acc_ref):
    """y = (x @ W_t) * s with low-precision output; f32 scratch accumulator.

    x_ref: (tm, tk)  activations (compute dtype)
    w_ref: (tk, tn)  pre-transposed weight tile (compute dtype)
    s_ref: (1, tn)   hoisted per-output-column scale (f32)
    o_ref: (tm, tn)  output tile (out dtype)
    acc_ref: (tm, tn) f32 accumulator scratch
    """
    k = pl.program_id(2)

    @pl.when(k == 0)
    def _():
        acc_ref[...] = jnp.zeros_like(acc_ref)

    acc_ref[...] += jnp.dot(x_ref[...], w_ref[...],
                            preferred_element_type=jnp.float32)

    @pl.when(k == pl.num_programs(2) - 1)
    def _():
        o_ref[...] = (acc_ref[...] * s_ref[...]).astype(o_ref.dtype)


def _mp_linear_kernel_f32out(x_ref, w_ref, s_ref, o_ref):
    """f32-output variant: accumulate directly into the resident output block."""
    k = pl.program_id(2)

    @pl.when(k == 0)
    def _():
        o_ref[...] = jnp.zeros_like(o_ref)

    o_ref[...] += jnp.dot(x_ref[...], w_ref[...],
                          preferred_element_type=jnp.float32)

    @pl.when(k == pl.num_programs(2) - 1)
    def _():
        o_ref[...] = o_ref[...] * s_ref[...]


# ----------------------------- wrapper --------------------------------------


def mp_linear(x, weight, gain=1.0, *, tm=512, tn=1024, tk=1024,
              cast_to_bf16=False, out_dtype=None):
    """x: [..., in_dim]; weight: [out_dim, in_dim]. Returns [..., out_dim]."""
    in_dim = x.shape[-1]
    N, K = weight.shape
    assert K == in_dim, "weight/in_dim mismatch"
    lead = x.shape[:-1]
    M = math.prod(lead)  # empty tuple -> 1
    out_dtype = jnp.dtype(out_dtype or x.dtype)

    compute_dtype = jnp.dtype(x.dtype)
    if cast_to_bf16 and compute_dtype == jnp.dtype(jnp.float32):
        compute_dtype = jnp.dtype(jnp.bfloat16)

    # ---- hoisted magnitude-preserving normalization: per-row output scale ----
    w32 = weight.astype(jnp.float32)
    row_norm = jnp.sqrt(jnp.sum(w32 * w32, axis=-1))          # ||W_row||_2, (N,)
    denom = EPS + row_norm * (1.0 / math.sqrt(K))             # normalize() denom
    scale = (gain / math.sqrt(K)) / denom                     # (N,) float32
    s2d = scale.reshape(1, N).astype(jnp.float32)

    # ---- tile selection (dtype-aware sublane rounding, chip-aware VMEM) ------
    sub = max(_sublane_multiple(compute_dtype), _sublane_multiple(out_dtype))

    tm_eff = min(_round_up(tm, sub), _round_up(M, sub))
    tn_eff = min(_round_up(tn, 128), _round_up(N, 128))
    if K <= tk:
        tk_eff, K_pad = K, K                      # full-K block (always legal)
    else:
        tk_eff = _round_up(tk, 128)
        K_pad = _round_up(K, tk_eff)

    in_b = compute_dtype.itemsize
    out_b = out_dtype.itemsize
    use_scratch = out_dtype != jnp.dtype(jnp.float32)

    def footprint(tm_, tn_, tk_):
        f = 2 * tm_ * tk_ * in_b        # x tile, double-buffered
        f += 2 * tk_ * tn_ * in_b       # weight tile, double-buffered
        f += 2 * tn_ * 4                # scale tile
        f += 2 * tm_ * tn_ * out_b      # output tile
        if use_scratch:
            f += tm_ * tn_ * 4          # f32 accumulator scratch
        return f

    vmem_cap = _vmem_capacity_bytes()
    budget = min(vmem_cap // 2, 64 << 20)  # 32 MiB on v7x, 64 MiB on v5e/v6e
    for _ in range(32):
        if footprint(tm_eff, tn_eff, tk_eff) <= budget:
            break
        if tn_eff > 256:
            tn_eff = _round_up(tn_eff // 2, 128)
        elif tm_eff > max(sub, 128):
            tm_eff = _round_up(max(tm_eff // 2, sub), sub)
        elif tk_eff > 256 and tk_eff % 256 == 0 and K_pad % (tk_eff // 2) == 0:
            tk_eff //= 2
        elif tn_eff > 128:
            tn_eff = 128
        elif tm_eff > sub:
            tm_eff = sub
        else:
            break

    vmem_limit = int(min(
        max(footprint(tm_eff, tn_eff, tk_eff) + (16 << 20), 32 << 20),
        vmem_cap - (8 << 20)))

    # ---- operands: no M/N padding; transpose W once; pad K only if needed ----
    x2d = x.reshape(M, K).astype(compute_dtype)
    wt = weight.astype(compute_dtype).T            # [K, N], native MXU RHS layout
    if K_pad != K:
        x2d = jnp.pad(x2d, ((0, 0), (0, K_pad - K)))
        wt = jnp.pad(wt, ((0, K_pad - K), (0, 0)))

    grid = (pl.cdiv(M, tm_eff), pl.cdiv(N, tn_eff), K_pad // tk_eff)
    # NOTE(v7x): for very small M and N the parallel grid may have a single
    # block and only use one TensorCore; negligible for the tiny-shape regime.

    if use_scratch:
        kernel = _mp_linear_kernel_scratch
        scratch = [pltpu.VMEM((tm_eff, tn_eff), jnp.float32)]
    else:
        kernel = _mp_linear_kernel_f32out
        scratch = []

    y = pl.pallas_call(
        kernel,
        out_shape=jax.ShapeDtypeStruct((M, N), out_dtype),
        grid_spec=pltpu.PrefetchScalarGridSpec(
            num_scalar_prefetch=0,
            grid=grid,
            in_specs=[
                pl.BlockSpec((tm_eff, tk_eff), lambda i, j, k: (i, k)),
                pl.BlockSpec((tk_eff, tn_eff), lambda i, j, k: (k, j)),
                pl.BlockSpec((1, tn_eff), lambda i, j, k: (0, j)),
            ],
            out_specs=pl.BlockSpec((tm_eff, tn_eff), lambda i, j, k: (i, j)),
            scratch_shapes=scratch,
        ),
        compiler_params=pltpu.CompilerParams(
            dimension_semantics=("parallel", "parallel", "arbitrary"),
            vmem_limit_bytes=vmem_limit,
        ),
    )(x2d, wt, s2d)

    return y.reshape(*lead, N)


# ----------------------------- reference ------------------------------------


def _reference(x, weight, gain=1.0):
    K = x.shape[-1]
    w = weight.astype(jnp.float32)
    norm = EPS + jnp.linalg.norm(w, axis=-1, keepdims=True) / math.sqrt(K)
    w_hat = (w / norm) * (gain / math.sqrt(K))
    return jnp.einsum("...k,nk->...n", x.astype(jnp.float32), w_hat)


if __name__ == "__main__":
    # Small shapes consistent with the module: batch=2, seq=8, hidden=32.
    batch, seq, in_dim, out_dim = 2, 8, 32, 32

    key = jax.random.PRNGKey(0)
    kx, kw, kx2 = jax.random.split(key, 3)
    x = jax.random.normal(kx, (batch, seq, in_dim), dtype=jnp.float32)
    weight = jax.random.normal(kw, (out_dim, in_dim), dtype=jnp.float32)

    # f32 path (exact).
    y = jax.block_until_ready(mp_linear(x, weight))
    assert y.shape == (batch, seq, out_dim)
    r = _reference(x, weight)
    assert jnp.allclose(y, r, atol=1e-4, rtol=1e-4), "mismatch vs reference (f32)"

    # Ragged leading shape (M = 15): exercises the unpadded partial M/N blocks.
    x2 = jax.random.normal(kx2, (3, 5, in_dim), dtype=jnp.float32)
    y2 = jax.block_until_ready(mp_linear(x2, weight))
    assert y2.shape == (3, 5, out_dim)
    r2 = _reference(x2, weight)
    assert jnp.allclose(y2, r2, atol=1e-4, rtol=1e-4), "mismatch vs reference (ragged)"

    # Opt-in bf16 operand path (f32 accumulation + f32 scale, f32 output).
    y3 = jax.block_until_ready(mp_linear(x, weight, cast_to_bf16=True))
    assert y3.shape == (batch, seq, out_dim)
    assert jnp.allclose(y3, r, atol=7.5e-2, rtol=7.5e-2), "mismatch vs reference (bf16)"

    print("KERNEL_OK")
</pallas_src>

<mosaic_0001>
module attributes {stable_mosaic.version = 11 : i64} {
  func.func @_mp_linear_kernel_f32out(%arg0: i32, %arg1: i32, %arg2: i32, %arg3: memref<16x32xf32, #tpu.memory_space<vmem>>, %arg4: memref<32x128xf32, #tpu.memory_space<vmem>>, %arg5: memref<1x128xf32, #tpu.memory_space<vmem>>, %arg6: memref<16x128xf32, #tpu.memory_space<vmem>>) attributes {dimension_semantics = [#tpu.dimension_semantics<parallel>, #tpu.dimension_semantics<parallel>, #tpu.dimension_semantics<arbitrary>], iteration_bounds = array<i64: 1, 1, 1>, scalar_prefetch = 0 : i64, scratch_operands = 0 : i64, tpu.core_type = #tpu.core_type<tc>, window_params = [{transform_indices = @transform_0, window_bounds = array<i64: 16, 32>}, {transform_indices = @transform_1, window_bounds = array<i64: 32, 128>}, {transform_indices = @transform_2, window_bounds = array<i64: 1, 128>}, {transform_indices = @transform_3, window_bounds = array<i64: 16, 128>}]} {
    %c0_i32 = arith.constant 0 : i32
    %0 = arith.cmpi eq, %arg2, %c0_i32 : i32
    %1 = arith.extui %0 : i1 to i32
    %c0_i32_0 = arith.constant 0 : i32
    %2 = arith.cmpi ne, %1, %c0_i32_0 : i32
    scf.if %2 {
      %cst_10 = arith.constant 0.000000e+00 : f32
      %12 = vector.broadcast %cst_10 : f32 to vector<16x128xf32>
      %c0_11 = arith.constant 0 : index
      %c0_12 = arith.constant 0 : index
      %13 = vector.load %arg6[%c0_11, %c0_12] : memref<16x128xf32, #tpu.memory_space<vmem>>, vector<16x128xf32>
      tpu.vector_store %arg6[%c0_11, %c0_12], %12 {strides = array<i32>} : memref<16x128xf32, #tpu.memory_space<vmem>>, vector<16x128xf32>,
    } else {
    }
    %c0 = arith.constant 0 : index
    %c0_1 = arith.constant 0 : index
    %3 = vector.load %arg6[%c0, %c0_1] : memref<16x128xf32, #tpu.memory_space<vmem>>, vector<16x128xf32>
    %c0_2 = arith.constant 0 : index
    %c0_3 = arith.constant 0 : index
    %4 = vector.load %arg3[%c0_2, %c0_3] : memref<16x32xf32, #tpu.memory_space<vmem>>, vector<16x32xf32>
    %c0_4 = arith.constant 0 : index
    %c0_5 = arith.constant 0 : index
    %5 = vector.load %arg4[%c0_4, %c0_5] : memref<32x128xf32, #tpu.memory_space<vmem>>, vector<32x128xf32>
    %cst = arith.constant dense<0.000000e+00> : vector<16x128xf32>
    %6 = tpu.matmul %4, %5, %cst {dimension_numbers = #tpu.dot_dimension_numbers<[1], [0], [0], [1], [0, 0, 1, 1], [], []>} : vector<16x32xf32>, vector<32x128xf32>, vector<16x128xf32> -> vector<16x128xf32>
    %7 = arith.addf %3, %6 : vector<16x128xf32>
    %c0_6 = arith.constant 0 : index
    %c0_7 = arith.constant 0 : index
    %8 = vector.load %arg6[%c0_6, %c0_7] : memref<16x128xf32, #tpu.memory_space<vmem>>, vector<16x128xf32>
    tpu.vector_store %arg6[%c0_6, %c0_7], %7 {strides = array<i32>} : memref<16x128xf32, #tpu.memory_space<vmem>>, vector<16x128xf32>,
    %c0_i32_8 = arith.constant 0 : i32
    %9 = arith.cmpi eq, %arg2, %c0_i32_8 : i32
    %10 = arith.extui %9 : i1 to i32
    %c0_i32_9 = arith.constant 0 : i32
    %11 = arith.cmpi ne, %10, %c0_i32_9 : i32
    scf.if %11 {
      %c0_10 = arith.constant 0 : index
      %c0_11 = arith.constant 0 : index
      %12 = vector.load %arg6[%c0_10, %c0_11] : memref<16x128xf32, #tpu.memory_space<vmem>>, vector<16x128xf32>
      %c0_12 = arith.constant 0 : index
      %c0_13 = arith.constant 0 : index
      %13 = vector.load %arg5[%c0_12, %c0_13] : memref<1x128xf32, #tpu.memory_space<vmem>>, vector<1x128xf32>
      %14 = vector.broadcast %13 : vector<1x128xf32> to vector<16x128xf32>
      %15 = arith.mulf %12, %14 : vector<16x128xf32>
      %c0_14 = arith.constant 0 : index
      %c0_15 = arith.constant 0 : index
      %16 = vector.load %arg6[%c0_14, %c0_15] : memref<16x128xf32, #tpu.memory_space<vmem>>, vector<16x128xf32>
      tpu.vector_store %arg6[%c0_14, %c0_15], %15 {strides = array<i32>} : memref<16x128xf32, #tpu.memory_space<vmem>>, vector<16x128xf32>,
    } else {
    }
    return
  }
  func.func @transform_0(%arg0: i32, %arg1: i32, %arg2: i32) -> (i32, i32) {
    %c0_i32 = arith.constant 0 : i32
    return %arg0, %arg2 : i32, i32
  }
  func.func @transform_1(%arg0: i32, %arg1: i32, %arg2: i32) -> (i32, i32) {
    %c0_i32 = arith.constant 0 : i32
    return %arg2, %arg1 : i32, i32
  }
  func.func @transform_2(%arg0: i32, %arg1: i32, %arg2: i32) -> (i32, i32) {
    %c0_i32 = arith.constant 0 : i32
    %c0_i32_0 = arith.constant 0 : i32
    return %c0_i32, %arg1 : i32, i32
  }
  func.func @transform_3(%arg0: i32, %arg1: i32, %arg2: i32) -> (i32, i32) {
    %c0_i32 = arith.constant 0 : i32
    return %arg0, %arg1 : i32, i32
  }
}

</mosaic_0001>

<bundles_post_ra>
// kernel: tpu_custom_call.1
= control target key start
LH: loop header
LB: loop body
LE: loop exit
PB: predicated region body
PF: predicated region fallthrough
CT: control target
= control target key end

     0   :  { %8 = vsyncpa [#allocation3], 0  ;;  %s356_s0 = inlined_call_operand.hbm [shape: f32[16,32], index: 0, kind: input, shape index: {}]   ;;  %s357_s1 = inlined_call_operand.hbm [shape: f32[32,32], index: 1, kind: input, shape index: {}]   ;;  %s358_s2 = inlined_call_operand.vmem [shape: f32[1,32], index: 2, kind: input, shape index: {}]   ;;  %s359_s3 = inlined_call_operand.hbm [shape: f32[16,32], index: 3, kind: output, shape index: {}]  }
   0x1   :  { %9 = vsyncpa [#allocation6], 0 }
   0x2   :  { %10 = vsyncpa [#allocation4], 0  ;;  %s283_s12 = smov [#allocation2]   ;;  %s211_s16 = scalar_lea.hbm %s356_s0, 256 }
   0x3   :  { %s16_s13 = sshll.u32 %s283_s12, 4  ;;  %p212_p0 = scmp.ne.s32.totalorder %s356_s0, %s211_s16  ;;  %s17_s13 = int_to_ptr.vmem [resolvable:$true] %s16_s13 }
   0x4   :  { %p215_p1 = scmp.lt.u32.totalorder %s211_s16, %s356_s0 }
   0x6   :  { %p217_p2 = pnand %p215_p1, %p212_p0 }
   0x8   :  { %220 = shalt.err (!%p217_p2)
}
   0x9   :  { %s221_s21 = scalar_lea.vmem %s17_s13, 256  ;;  %p226_p4 = scmp.lt.s32.totalorder %s17_s13, %s17_s13 }
   0xa   :  { %p222_p3 = scmp.ne.s32.totalorder %s17_s13, %s221_s21  ;;  %p227_p5 = scmp.lt.s32.totalorder %s221_s21, %s221_s21 }
   0xc   :  { %p228_p6 = por %p227_p5, %p226_p4 }
   0xe   :  { %p229_p7 = pnand %p228_p6, %p222_p3 }
  0x10   :  { %232 = shalt.err (!%p229_p7)
}
  0x11   :  { %s284_s22 = smov 128   ;;  %s285_s23 = smov 8  }
  0x12   :  { %22 = dma.hbm_to_vmem [thread:$0]  %s356_s0, 256, %s17_s13, [#allocation3], %s284_s22, %s284_s22, %s285_s23  }
  0x13   :  { %s286_s26 = smov [#allocation5]   ;;  %s233_s30 = scalar_lea.hbm %s357_s1, 512 }
  0x14   :  { %s28_s27 = sshll.u32 %s286_s26, 4  ;;  %p234_p8 = scmp.ne.s32.totalorder %s357_s1, %s233_s30  ;;  %s29_s27 = int_to_ptr.vmem [resolvable:$true] %s28_s27 }
  0x15   :  { %p237_p9 = scmp.lt.u32.totalorder %s233_s30, %s357_s1 }
  0x17   :  { %p239_p10 = pnand %p237_p9, %p234_p8 }
  0x19   :  { %242 = shalt.err (!%p239_p10)
}
  0x1a   :  { %s243_s8 = scalar_lea.vmem %s29_s27, 512  ;;  %p248_p12 = scmp.lt.s32.totalorder %s29_s27, %s29_s27 }
  0x1b   :  { %p244_p11 = scmp.ne.s32.totalorder %s29_s27, %s243_s8  ;;  %p249_p13 = scmp.lt.s32.totalorder %s243_s8, %s243_s8 }
  0x1d   :  { %p250_p0 = por %p249_p13, %p248_p12 }
  0x1f   :  { %p251_p1 = pnand %p250_p0, %p244_p11 }
  0x21   :  { %254 = shalt.err (!%p251_p1)
}
  0x22   :  { %34 = dma.hbm_to_vmem [thread:$0]  %s357_s1, 512, %s29_s27, [#allocation6], %s284_s22, %s284_s22, %s285_s23  }
  0x23   :  { %277 = dma.done.wait [#allocation3], 256  }
  0x24   :  { %278 = vsyncadd [#allocation3], 4294967040 }
  0x25   :  { %279 = dma.done.wait [#allocation6], 512  }
  0x26   :  { %280 = vsyncadd [#allocation6], 4294966784  ;;  %vm57_vm0 = vcmask 261120   ;;  %v53_v0 = vld [vmem:[#allocation5] sm:$0xff]  ;;  %v54_v1 = vld [vmem:[#allocation5 + $0x8] sm:$0xff]  ;;  %s287_s11 = smov [#allocation7]  }
  0x27   :  { %v55_v2 = vld [vmem:[#allocation5 + $0x10] sm:$0xff]  ;;  %v197_v3 = vpack.c.bf16 %v54_v1, %v53_v0  ;;  %v56_v4 = vld [vmem:[#allocation5 + $0x18] sm:$0xff]  ;;  %s164_s12 = sshll.u32 %s287_s11, 4  ;;  %s165_s12 = int_to_ptr.vmem [resolvable:$true] %s164_s12 }
  0x28   :  { %v51_v5 = vld [vmem:[#allocation2] sm:$0xff]  ;;  %v201_v6 = vpack.c.bf16 %v56_v4, %v55_v2  ;;  %v52_v7 = vld [vmem:[#allocation2 + $0x8] sm:$0xff]  ;;  %s255_s13 = scalar_lea.vmem %s165_s12, 256  ;;  %p260_p3 = scmp.lt.s32.totalorder %s165_s12, %s165_s12 }
  0x29   :  { %194 = vmatprep.mubr.msk.f32.mxu0 %vm57_vm0, %v51_v5  ;;  %198 = vmatprep.subr.bf16.mxu0 %v197_v3  ;;  %v179_v9 = vld [vmem:[%s358_s2] ss:$0 sm:$0xff]  ;;  %p256_p2 = scmp.ne.s32.totalorder %s165_s12, %s255_s13  ;;  %p261_p4 = scmp.lt.s32.totalorder %s255_s13, %s255_s13 }
  0x2a   :  { %200 = vmatpush3.bf16.msra.mxu0 %v197_v3 }
  0x2b   :  { %202 = vmatprep.subr.bf16.mxu0 %v201_v6  ;;  %p262_p5 = por %p261_p4, %p260_p3 }
  0x2d   :  { %p263_p6 = pnand %p262_p5, %p256_p2 }
  0x2e   :  { %204 = vmatpush3.bf16.msra.mxu0 %v201_v6 }
  0x31   :  { %195 = vmatmul.mubr.msk.f32.vlgmr.msra.gmra.mrb[0].mxu0 %vm57_vm0, %v52_v7 }
 0x104   :  { %v196_v8 = vpop.f32.mrb[0].mxu0 }
 0x105   :  { %v130_v10 = vpop.f32.mrb[1].mxu0  ;;  %v156_v11 = vmul.f32 %v196_v8, %v179_v9 }
 0x106   :  { %v155_v12 = vmul.f32 %v179_v9, %v130_v10 }
 0x107   :  { %158 = vst [vmem:[#allocation7 + $0x8] sm:$0xff] %v156_v11 }
 0x108   :  { %157 = vst [vmem:[#allocation7] sm:$0xff] %v155_v12 }
 0x109   :  { %266 = shalt.err (!%p263_p6)
}
 0x10a   :  { %s267_s16 = scalar_lea.hbm %s359_s3, 256 }
 0x10b   :  { %p268_p7 = scmp.ne.s32.totalorder %s359_s3, %s267_s16  ;;  %p271_p8 = scmp.lt.u32.totalorder %s267_s16, %s359_s3 }
 0x10d   :  { %p273_p9 = pnand %p271_p8, %p268_p7 }
 0x10f   :  { %276 = shalt.err (!%p273_p9)
}
 0x110   :  { %170 = dma.vmem_to_hbm [thread:$0]  %s165_s12, 256, %s359_s3, [#allocation4], %s284_s22, %s284_s22, %s285_s23  }
 0x111   :  { %281 = dma.done.wait [#allocation4], 256  }
 0x112   :  { %282 = vsyncadd [#allocation4], 4294967040 }
 0x113   :  { %174 = vsyncpa [#allocation3], 1 }
 0x114   :  { %175 = vsyncpa [#allocation6], 1 }
 0x115   :  { %176 = vsyncpa [#allocation4], 1 }

</bundles_post_ra>
